<compile_context>
chip_gen: v7x
topology: tpu7x:2x2x1
jax: 0.10.0
libtpu: 0.0.40
codegen_flags: <defaults>
</compile_context>

<pallas_src>
import jax
import jax.numpy as jnp
from jax.experimental import pallas as pl
from jax.experimental.pallas import tpu as pltpu

LANE = 128


def _round_up(x, m):
    return (x + m - 1) // m * m


def _pad2d(a, rows, cols):
    r, c = a.shape
    return jnp.pad(a, ((0, rows - r), (0, cols - c)))


# ---- Kernel 1: SAGEConv1 + relu (+ eval dropout) + both h1-side matmuls of SAGEConv2 ----
def sage_layer1_kernel(a_ref, xs_ref, xr_ref, w1_ref, b1_ref, w2_ref, z_ref, r_ref):
    # a_ref:  [tm, N]     bf16  row-normalized adjacency block (dst rows x all src)
    # xs_ref: [N,  Fp]    bf16  all-node features (contraction operand of A @ X)
    # xr_ref: [tm, Fp]    bf16  this block's node features (root/self term)
    # w1_ref: [2Fp, Hp]   bf16  [Wl1 ; Wr1] stacked along the contraction axis
    # b1_ref: [1,  Hp]    f32
    # w2_ref: [Hp, 2Cp]   bf16  [Wl2 | Wr2] concatenated along the output axis
    # z_ref:  [tm, Cp]    bf16  h1 @ Wl2  (aggregated through A in pass 2)
    # r_ref:  [tm, Cp]    f32   h1 @ Wr2  (root term of layer 2)
    agg = jnp.dot(a_ref[...], xs_ref[...],
                  preferred_element_type=jnp.float32)                         # [tm, Fp]
    cat = jnp.concatenate([agg.astype(jnp.bfloat16), xr_ref[...]], axis=-1)   # [tm, 2Fp]
    h1 = jnp.dot(cat, w1_ref[...], preferred_element_type=jnp.float32) + b1_ref[...]
    h1 = jnp.maximum(h1, 0.0)                                                 # relu
    # dropout(p=0.5, training=False) -> identity
    zr = jnp.dot(h1.astype(jnp.bfloat16), w2_ref[...],
                 preferred_element_type=jnp.float32)                          # [tm, 2Cp]
    cp = z_ref.shape[-1]
    z_ref[...] = zr[:, :cp].astype(z_ref.dtype)
    r_ref[...] = zr[:, cp:]


# ---- Kernel 2: out = A @ (h1 @ Wl2) + h1 @ Wr2 + b2  (reassociated layer 2) ----
def sage_layer2_kernel(a_ref, z_ref, r_ref, b2_ref, out_ref):
    agg = jnp.dot(a_ref[...], z_ref[...], preferred_element_type=jnp.float32)
    out_ref[...] = agg + r_ref[...] + b2_ref[...]


def graphsage_forward(a, x, wl1, wr1, b1, wl2, wr2, b2, *, block_rows=32):
    n, f = x.shape
    h = wl1.shape[1]
    c = wl2.shape[1]
    fp = _round_up(f, LANE)
    hp = _round_up(h, LANE)
    cp = _round_up(c, LANE)
    tm = min(block_rows, n)
    assert n % tm == 0 and (tm % 8 == 0 or tm == n)

    # bf16 MXU operands, lane-dense (128-padded) layouts, weight fusion done ONCE here.
    a_bf = a.astype(jnp.bfloat16)                                        # [N, N]
    x_p = _pad2d(x, n, fp).astype(jnp.bfloat16)                          # [N, Fp]
    w1 = jnp.concatenate([_pad2d(wl1, fp, hp), _pad2d(wr1, fp, hp)],
                         axis=0).astype(jnp.bfloat16)                    # [2Fp, Hp]
    b1_p = _pad2d(b1, 1, hp).astype(jnp.float32)                         # [1, Hp]
    w2 = jnp.concatenate([_pad2d(wl2, hp, cp), _pad2d(wr2, hp, cp)],
                         axis=1).astype(jnp.bfloat16)                    # [Hp, 2Cp]
    b2_p = _pad2d(b2, 1, cp).astype(jnp.float32)                         # [1, Cp]

    grid = (n // tm,)
    parallel = pltpu.CompilerParams(dimension_semantics=("parallel",))

    z, r = pl.pallas_call(
        sage_layer1_kernel,
        out_shape=(jax.ShapeDtypeStruct((n, cp), jnp.bfloat16),
                   jax.ShapeDtypeStruct((n, cp), jnp.float32)),
        grid=grid,
        in_specs=[
            pl.BlockSpec((tm, n), lambda i: (i, 0)),        # A row block (dst rows)
            pl.BlockSpec((n, fp), lambda i: (0, 0)),        # x, all src rows
            pl.BlockSpec((tm, fp), lambda i: (i, 0)),       # x, this row block (root)
            pl.BlockSpec((2 * fp, hp), lambda i: (0, 0)),   # fused layer-1 weights
            pl.BlockSpec((1, hp), lambda i: (0, 0)),        # bias 1
            pl.BlockSpec((hp, 2 * cp), lambda i: (0, 0)),   # fused layer-2 weights
        ],
        out_specs=(pl.BlockSpec((tm, cp), lambda i: (i, 0)),
                   pl.BlockSpec((tm, cp), lambda i: (i, 0))),
        compiler_params=parallel,
    )(a_bf, x_p, x_p, w1, b1_p, w2)

    out_p = pl.pallas_call(
        sage_layer2_kernel,
        out_shape=jax.ShapeDtypeStruct((n, cp), jnp.float32),
        grid=grid,
        in_specs=[
            pl.BlockSpec((tm, n), lambda i: (i, 0)),        # A row block
            pl.BlockSpec((n, cp), lambda i: (0, 0)),        # z, all src rows
            pl.BlockSpec((tm, cp), lambda i: (i, 0)),       # r, this row block
            pl.BlockSpec((1, cp), lambda i: (0, 0)),        # bias 2
        ],
        out_specs=pl.BlockSpec((tm, cp), lambda i: (i, 0)),
        compiler_params=parallel,
    )(a_bf, z, r, b2_p)

    return out_p[:, :c]


def build_mean_adjacency(edge_index, num_nodes):
    """Dense row-normalized aggregation matrix A[i, j] = 1/deg_in(i) for edge j->i."""
    src = edge_index[0]
    dst = edge_index[1]
    adj = jnp.zeros((num_nodes, num_nodes), jnp.float32)
    adj = adj.at[dst, src].add(1.0)
    deg = jnp.sum(adj, axis=1, keepdims=True)
    return adj / jnp.maximum(deg, 1.0)


if __name__ == "__main__":
    key = jax.random.PRNGKey(0)

    # Small synthetic graph consistent with the module's forward().
    N = 64          # nodes
    F = 16          # data.num_features
    H = 32          # hidden_channels
    C = 8           # data.num_classes
    E = 256         # edges

    k_x, k_e1, k_e2, k_wl1, k_wr1, k_b1, k_wl2, k_wr2, k_b2 = jax.random.split(key, 9)

    x = jax.random.normal(k_x, (N, F), jnp.float32)
    edge_index = jnp.stack([
        jax.random.randint(k_e1, (E,), 0, N),
        jax.random.randint(k_e2, (E,), 0, N),
    ])  # [2, E]

    # Deterministic parameter init (weights stored pre-transposed: [in, out]).
    def init(k, shape, fan_in):
        bound = 1.0 / jnp.sqrt(fan_in)
        return jax.random.uniform(k, shape, jnp.float32, -bound, bound)

    wl1 = init(k_wl1, (F, H), F)     # conv1.lin_l.weight^T
    wr1 = init(k_wr1, (F, H), F)     # conv1.lin_r.weight^T (no bias)
    b1 = init(k_b1, (1, H), F)       # conv1.lin_l.bias
    wl2 = init(k_wl2, (H, C), H)     # conv2.lin_l.weight^T
    wr2 = init(k_wr2, (H, C), H)     # conv2.lin_r.weight^T
    b2 = init(k_b2, (1, C), H)       # conv2.lin_l.bias

    a = build_mean_adjacency(edge_index, N)

    out = graphsage_forward(a, x, wl1, wr1, b1, wl2, wr2, b2)
    jax.block_until_ready(out)

    # Pure-JAX f32 reference check (bf16 MXU operands => loosened tolerance).
    agg1 = a @ x
    h1 = jnp.maximum(agg1 @ wl1 + b1 + x @ wr1, 0.0)
    ref = (a @ h1) @ wl2 + b2 + h1 @ wr2
    assert out.shape == (N, C)
    assert jnp.allclose(out, ref, atol=3e-2, rtol=3e-2), float(jnp.max(jnp.abs(out - ref)))

    print("KERNEL_OK")
</pallas_src>

<mosaic_0001>
module attributes {stable_mosaic.version = 11 : i64} {
  func.func @sage_layer1_kernel(%arg0: i32, %arg1: memref<32x64xbf16, #tpu.memory_space<vmem>>, %arg2: memref<64x128xbf16, #tpu.memory_space<vmem>>, %arg3: memref<32x128xbf16, #tpu.memory_space<vmem>>, %arg4: memref<256x128xbf16, #tpu.memory_space<vmem>>, %arg5: memref<1x128xf32, #tpu.memory_space<vmem>>, %arg6: memref<128x256xbf16, #tpu.memory_space<vmem>>, %arg7: memref<32x128xbf16, #tpu.memory_space<vmem>>, %arg8: memref<32x128xf32, #tpu.memory_space<vmem>>) attributes {dimension_semantics = [#tpu.dimension_semantics<parallel>], iteration_bounds = array<i64: 2>, scalar_prefetch = 0 : i64, scratch_operands = 0 : i64, tpu.core_type = #tpu.core_type<tc>, window_params = [{transform_indices = @transform_0, window_bounds = array<i64: 32, 64>}, {pipeline_mode = #tpu.pipeline_mode<synchronous>, transform_indices = @transform_1, window_bounds = array<i64: 64, 128>}, {transform_indices = @transform_2, window_bounds = array<i64: 32, 128>}, {pipeline_mode = #tpu.pipeline_mode<synchronous>, transform_indices = @transform_3, window_bounds = array<i64: 256, 128>}, {pipeline_mode = #tpu.pipeline_mode<synchronous>, transform_indices = @transform_4, window_bounds = array<i64: 1, 128>}, {pipeline_mode = #tpu.pipeline_mode<synchronous>, transform_indices = @transform_5, window_bounds = array<i64: 128, 256>}, {transform_indices = @transform_6, window_bounds = array<i64: 32, 128>}, {transform_indices = @transform_7, window_bounds = array<i64: 32, 128>}]} {
    %c0 = arith.constant 0 : index
    %c0_0 = arith.constant 0 : index
    %0 = vector.load %arg1[%c0, %c0_0] : memref<32x64xbf16, #tpu.memory_space<vmem>>, vector<32x64xbf16>
    %c0_1 = arith.constant 0 : index
    %c0_2 = arith.constant 0 : index
    %1 = vector.load %arg2[%c0_1, %c0_2] : memref<64x128xbf16, #tpu.memory_space<vmem>>, vector<64x128xbf16>
    %cst = arith.constant dense<0.000000e+00> : vector<32x128xf32>
    %2 = tpu.matmul %0, %1, %cst {dimension_numbers = #tpu.dot_dimension_numbers<[1], [0], [0], [1], [0, 0, 1, 1], [], []>} : vector<32x64xbf16>, vector<64x128xbf16>, vector<32x128xf32> -> vector<32x128xf32>
    %3 = arith.truncf %2 : vector<32x128xf32> to vector<32x128xbf16>
    %c0_3 = arith.constant 0 : index
    %c0_4 = arith.constant 0 : index
    %4 = vector.load %arg3[%c0_3, %c0_4] : memref<32x128xbf16, #tpu.memory_space<vmem>>, vector<32x128xbf16>
    %5 = tpu.concatenate %3, %4 in 1 : vector<32x128xbf16>, vector<32x128xbf16> -> vector<32x256xbf16>
    %c0_5 = arith.constant 0 : index
    %c0_6 = arith.constant 0 : index
    %6 = vector.load %arg4[%c0_5, %c0_6] : memref<256x128xbf16, #tpu.memory_space<vmem>>, vector<256x128xbf16>
    %cst_7 = arith.constant dense<0.000000e+00> : vector<32x128xf32>
    %7 = tpu.matmul %5, %6, %cst_7 {dimension_numbers = #tpu.dot_dimension_numbers<[1], [0], [0], [1], [0, 0, 1, 1], [], []>} : vector<32x256xbf16>, vector<256x128xbf16>, vector<32x128xf32> -> vector<32x128xf32>
    %c0_8 = arith.constant 0 : index
    %c0_9 = arith.constant 0 : index
    %8 = vector.load %arg5[%c0_8, %c0_9] : memref<1x128xf32, #tpu.memory_space<vmem>>, vector<1x128xf32>
    %9 = vector.broadcast %8 : vector<1x128xf32> to vector<32x128xf32>
    %10 = arith.addf %7, %9 : vector<32x128xf32>
    %cst_10 = arith.constant 0.000000e+00 : f32
    %11 = vector.broadcast %cst_10 : f32 to vector<32x128xf32>
    %12 = arith.maximumf %10, %11 : vector<32x128xf32>
    %13 = arith.truncf %12 : vector<32x128xf32> to vector<32x128xbf16>
    %c0_11 = arith.constant 0 : index
    %c0_12 = arith.constant 0 : index
    %14 = vector.load %arg6[%c0_11, %c0_12] : memref<128x256xbf16, #tpu.memory_space<vmem>>, vector<128x256xbf16>
    %cst_13 = arith.constant dense<0.000000e+00> : vector<32x256xf32>
    %15 = tpu.matmul %13, %14, %cst_13 {dimension_numbers = #tpu.dot_dimension_numbers<[1], [0], [0], [1], [0, 0, 1, 1], [], []>} : vector<32x128xbf16>, vector<128x256xbf16>, vector<32x256xf32> -> vector<32x256xf32>
    %16 = vector.extract_strided_slice %15 {offsets = [0, 0], sizes = [32, 128], strides = [1, 1]} : vector<32x256xf32> to vector<32x128xf32>
    %17 = arith.truncf %16 : vector<32x128xf32> to vector<32x128xbf16>
    %c0_14 = arith.constant 0 : index
    %c0_15 = arith.constant 0 : index
    %18 = vector.load %arg7[%c0_14, %c0_15] : memref<32x128xbf16, #tpu.memory_space<vmem>>, vector<32x128xbf16>
    tpu.vector_store %arg7[%c0_14, %c0_15], %17 {strides = array<i32>} : memref<32x128xbf16, #tpu.memory_space<vmem>>, vector<32x128xbf16>,
    %19 = vector.extract_strided_slice %15 {offsets = [0, 128], sizes = [32, 128], strides = [1, 1]} : vector<32x256xf32> to vector<32x128xf32>
    %c0_16 = arith.constant 0 : index
    %c0_17 = arith.constant 0 : index
    %20 = vector.load %arg8[%c0_16, %c0_17] : memref<32x128xf32, #tpu.memory_space<vmem>>, vector<32x128xf32>
    tpu.vector_store %arg8[%c0_16, %c0_17], %19 {strides = array<i32>} : memref<32x128xf32, #tpu.memory_space<vmem>>, vector<32x128xf32>,
    return
  }
  func.func @transform_0(%arg0: i32) -> (i32, i32) {
    %c0_i32 = arith.constant 0 : i32
    %c0_i32_0 = arith.constant 0 : i32
    return %arg0, %c0_i32 : i32, i32
  }
  func.func @transform_1(%arg0: i32) -> (i32, i32) {
    %c0_i32 = arith.constant 0 : i32
    %c0_i32_0 = arith.constant 0 : i32
    %c0_i32_1 = arith.constant 0 : i32
    return %c0_i32, %c0_i32_0 : i32, i32
  }
  func.func @transform_2(%arg0: i32) -> (i32, i32) {
    %c0_i32 = arith.constant 0 : i32
    %c0_i32_0 = arith.constant 0 : i32
    return %arg0, %c0_i32 : i32, i32
  }
  func.func @transform_3(%arg0: i32) -> (i32, i32) {
    %c0_i32 = arith.constant 0 : i32
    %c0_i32_0 = arith.constant 0 : i32
    %c0_i32_1 = arith.constant 0 : i32
    return %c0_i32, %c0_i32_0 : i32, i32
  }
  func.func @transform_4(%arg0: i32) -> (i32, i32) {
    %c0_i32 = arith.constant 0 : i32
    %c0_i32_0 = arith.constant 0 : i32
    %c0_i32_1 = arith.constant 0 : i32
    return %c0_i32, %c0_i32_0 : i32, i32
  }
  func.func @transform_5(%arg0: i32) -> (i32, i32) {
    %c0_i32 = arith.constant 0 : i32
    %c0_i32_0 = arith.constant 0 : i32
    %c0_i32_1 = arith.constant 0 : i32
    return %c0_i32, %c0_i32_0 : i32, i32
  }
  func.func @transform_6(%arg0: i32) -> (i32, i32) {
    %c0_i32 = arith.constant 0 : i32
    %c0_i32_0 = arith.constant 0 : i32
    return %arg0, %c0_i32 : i32, i32
  }
  func.func @transform_7(%arg0: i32) -> (i32, i32) {
    %c0_i32 = arith.constant 0 : i32
    %c0_i32_0 = arith.constant 0 : i32
    return %arg0, %c0_i32 : i32, i32
  }
}

</mosaic_0001>

<bundles_post_ra>
// kernel: tpu_custom_call.1
= control target key start
LH: loop header
LB: loop body
LE: loop exit
PB: predicated region body
PF: predicated region fallthrough
CT: control target
= control target key end

     0   :  { %s2021_s0 = inlined_call_operand.hbm [shape: bf16[64,64], index: 0, kind: input, shape index: {}]   ;;  %s2022_s1 = inlined_call_operand.hbm [shape: bf16[64,128], index: 1, kind: input, shape index: {}]   ;;  %s2023_s2 = inlined_call_operand.hbm [shape: bf16[64,128], index: 2, kind: input, shape index: {}]   ;;  %s2024_s3 = inlined_call_operand.hbm [shape: bf16[256,128], index: 3, kind: input, shape index: {}]   ;;  %s2025_s4 = inlined_call_operand.vmem [shape: f32[1,128], index: 4, kind: input, shape index: {}]   ;;  %s2026_s5 = inlined_call_operand.hbm [shape: bf16[128,256], index: 5, kind: input, shape index: {}]   ;;  %s2027_s6 = inlined_call_operand.hbm [shape: bf16[64,128], index: 6, kind: output, shape index: {0}]   ;;  %s2028_s7 = inlined_call_operand.hbm [shape: f32[64,128], index: 7, kind: output, shape index: {1}]  }
   0x1   :  { %2048 = sst [smem:[#allocation27_spill]] %s2021_s0 }
   0x2   :  { %2049 = sst [smem:[#allocation28_spill]] %s2022_s1 }
   0x3   :  { %13 = vsyncpa [#allocation3], 0 }
   0x4   :  { %15 = vsyncpa [#allocation3 + $0x1], 0 }
   0x5   :  { %16 = vsyncpa [#allocation6], 0 }
   0x6   :  { %17 = vsyncpa [#allocation10], 0 }
   0x7   :  { %18 = vsyncpa [#allocation4], 0 }
   0x8   :  { %20 = vsyncpa [#allocation4 + $0x1], 0 }
   0x9   :  { %21 = vsyncpa [#allocation13], 0 }
   0xa   :  { %23 = vsyncpa [#allocation13 + $0x1], 0  ;;  %s1666_s24 = smov 0   ;;  %s1668_s25 = smov 0  }
   0xb   :  { %s1670_s26 = smov 0   ;;  %s1672_s27 = smov 0  }
   0xc LB: > { %2050 = sst [smem:[#allocation21_spill]] %s1596_s24  ;;  %s1687_s28 = sadd.s32 4294967295, %s1608_s27   ;;  %s1608_s27 = sphi %s1672_s27, %s2086_s27   ;;  %s1604_s26 = sphi %s1670_s26, %s2088_s26   ;;  %s1600_s25 = sphi %s1668_s25, %s2090_s25   ;;  %s1596_s24 = sphi %s1666_s24, %s2089_s24  }
   0xd   : > { %2051 = sst [smem:[#allocation22_spill]] %s1604_s26  ;;  %s1066_s29 = sadd.s32 4294967294, %s1608_s27  }
   0xe   : > { %2052 = sst [smem:[#allocation23_spill]] %s1608_s27  ;;  %p49_p0 = scmp.ne.s32.totalorder %s1600_s25, %s1596_s24 }
   0xf   : > { %p2029_p1 = scmp.eq.s32.totalorder %s1687_s28, 0  ;;  %p189_p3 = scmp.eq.s32.totalorder %s1066_s29, 1 }
  0x10   : > { %p1067_p5 = scmp.ge.s32.totalorder %s1608_s27, 1  ;;  %p222_p7 = scmp.lt.s32.totalorder %s1608_s27, 3 }
  0x11   : > { %p1696_p4 = por %p2029_p1, %p49_p0  ;;  %p1701_p6 = por %p189_p3, %p49_p0 }
  0x12   : > { %p1706_p8 = pnand %p1067_p5, %p222_p7  ;;  %s1610_s10 = smov [#allocation5]  }
  0x13   : > { %s2053_s30 = scalar_select %p1696_p4, 1, 0 }
  0x14   : > { %s2054_s8 = scalar_select %p1701_p6, 1, 0 }
  0x15   : > { %s2056_s9 = scalar_select %p1706_p8, 1, 0 }
  0x16   : > { %2055 = sst [smem:[#allocation24_spill]] %s2054_s8  ;;  %s234_s11 = sshll.u32 %s1610_s10, 4  ;;  %s1710_s11 = int_to_ptr.vmem [resolvable:$true] %s234_s11 }
  0x17   : > { %p1226_p9 = pneg %p1706_p8  ;;  %s1722_s13 = sadd.s32 1, %s1608_s27  }
  0x18   : > { %2058 = sst [smem:[#allocation25_spill]] %s1722_s13  ;;  %s36_s14 = sadd.s32 1, %s1604_s26 }
  0x19   : > { %p1717_p11 = pnand %p1226_p9, %p2029_p1  ;;  %s33_s15 = ssub.s32 %s1608_s27, %s1722_s13 }
  0x1a   : > { %s2059_s1 = sld [smem:[#allocation28_spill]] }
  0x1b   : > { %s2057_s12 = scalar_select %p1717_p11, 1, 0 }
  0x1c   : > { %p1735_p13 = pneg %p1717_p11 }
  0x20   : > { %s1350_s18 = scalar_lea.hbm %s2059_s1, 512 }
  0x21   : > { %p1351_p12 = scmp.ne.s32.totalorder %s2059_s1, %s1350_s18  ;;  %p1357_p5 = scmp.lt.u32.totalorder %s1350_s18, %s2059_s1 }
  0x23   : > { %p1353_p0 = pnand %p1735_p13, %p1351_p12 }
  0x25   : > { %p1354_p3 = pneg %p1353_p0 }
  0x27   : > { %p1359_p7 = pnand %p1357_p5, %p1354_p3 }
  0x29   : > { %1362 = shalt.err (!%p1359_p7)
}
  0x2a   : > { %s1363_s29 = scalar_lea.vmem %s1710_s11, 512  ;;  %p1371_p2 = scmp.lt.s32.totalorder %s1710_s11, %s1710_s11 }
  0x2b   : > { %p1364_p9 = scmp.ne.s32.totalorder %s1710_s11, %s1363_s29  ;;  %p1372_p6 = scmp.lt.s32.totalorder %s1363_s29, %s1363_s29 }
  0x2d   : > { %p1366_p10 = pnand %p1364_p9, %p1735_p13  ;;  %p1373_p12 = por %p1372_p6, %p1371_p2 }
  0x2f   : > { %p1367_p1 = pneg %p1366_p10 }
  0x31   : > { %p1374_p0 = pnand %p1373_p12, %p1367_p1 }
  0x33   : > { %1377 = shalt.err (!%p1374_p0)
}
  0x34   : > { %s2034_s10 = smov 64   ;;  %s2036_s16 = smov 4  }
  0x35   : > { %1229 = dma.hbm_to_vmem [thread:$0]  (!%p1717_p11), %s2059_s1, 512, %s1710_s11, [#allocation6], %s2034_s10, %s2034_s10, %s2036_s16  }
  0x36   : > { %p34_p1 = scmp.eq.s32.totalorder %s33_s15, 0  ;;  %p43_p2 = scmp.ne.s32.totalorder %s1604_s26, %s1600_s25 }
  0x37   : > { %p44_p6 = scmp.eq.s32.totalorder %s1608_s27, 0  ;;  %p1253_p10 = scmp.lt.s32.totalorder %s1608_s27, 2 }
  0x38   : > { %s1764_s19 = scalar_select %p34_p1, %s1604_s26, %s36_s14  }
  0x39   : > { %p45_p3 = por %p44_p6, %p43_p2  ;;  %p2062_p5 = scmp.eq.s32.totalorder %s1687_s28, 1 }
  0x3a   : > { %2061 = sst [smem:[#allocation26_spill]] %s1764_s19  ;;  %s277_s22 = sand.u32 1, %s1608_s27  }
  0x3b   : > { %p1768_p7 = por %p2062_p5, %p43_p2  ;;  %s279_s23 = sand.u32 1, %s1604_s26  }
  0x3c   : > { %s1072_s29 = sshll.u32 %s279_s23, 4  ;;  %s1141_s13 = sshll.u32 %s1608_s27, 8 }
  0x3d   : > { %s2063_s20 = scalar_select %p1768_p7, 1, 0 }
  0x3e   : > { %s2064_s0 = sld [smem:[#allocation27_spill]]  ;;  %s281_s14 = scalar_lea.vmem [#allocation2], %s1072_s29 }
  0x3f   : > { %s288_s15 = sshll.u32 %s281_s14, 4  ;;  %p1782_p9 = pnand %p1253_p10, %p45_p3  ;;  %s1780_s15 = int_to_ptr.vmem [resolvable:$true] %s288_s15 }
  0x40   : > { %s1789_s24 = scalar_lea.hbm %s2023_s2, %s1141_s13  ;;  %s302_s8 = scalar_lea.vmem [#allocation7], %s1072_s29 }
  0x41   : > { %s2065_s17 = scalar_select %p1782_p9, 1, 0 }
  0x42   : > { %s1791_s10 = sshll.u32 %s302_s8, 4  ;;  %s1793_s16 = scalar_lea.sflag [#allocation3], %s277_s22  ;;  %s1825_s10 = int_to_ptr.vmem [resolvable:$true] %s1791_s10 }
  0x43   : > { %p2045_p0 = pneg %p1782_p9 }
  0x44   : > { %s1778_s11 = scalar_lea.hbm %s2064_s0, %s1141_s13  ;;  %s1383_s18 = scalar_lea.hbm %s2064_s0, 512 }
  0x45   : > { %s1378_s14 = scalar_lea.hbm %s1778_s11, 256  ;;  %p1384_p6 = scmp.lt.u32.totalorder %s1778_s11, %s2064_s0 }
  0x46   : > { %p1379_p12 = scmp.ne.s32.totalorder %s1778_s11, %s1378_s14  ;;  %p1385_p10 = scmp.lt.u32.totalorder %s1383_s18, %s1378_s14 }
  0x47   : > { %p1387_p5 = scmp.lt.u32.totalorder %s1378_s14, %s1778_s11 }
  0x48   : > { %p1381_p1 = pnand %p2045_p0, %p1379_p12  ;;  %p1386_p3 = por %p1385_p10, %p1384_p6 }
  0x4a   : > { %p1382_p2 = pneg %p1381_p1  ;;  %p1388_p7 = por %p1387_p5, %p1386_p3 }
  0x4c   : > { %p1389_p4 = pnand %p1388_p7, %p1382_p2 }
  0x4e   : > { %1392 = shalt.err (!%p1389_p4)
}
  0x4f   : > { %s1393_s22 = scalar_lea.vmem %s1780_s15, 256  ;;  %s1613_s1 = smov [#allocation2]  }
  0x50   : > { %p1394_p12 = scmp.ne.s32.totalorder %s1780_s15, %s1393_s22  ;;  %s1398_s19 = sshll.u32 %s1613_s1, 4  ;;  %s1399_s19 = int_to_ptr.vmem [resolvable:$false] %s1398_s19 }
  0x51   : > { %s1400_s29 = scalar_lea.vmem %s1399_s19, 512  ;;  %p1401_p11 = scmp.lt.s32.totalorder %s1780_s15, %s1399_s19 }
  0x52   : > { %p1396_p1 = pnand %p1394_p12, %p2045_p0  ;;  %p1402_p6 = scmp.lt.s32.totalorder %s1400_s29, %s1393_s22 }
  0x54   : > { %p1397_p8 = pneg %p1396_p1  ;;  %p1403_p10 = por %p1402_p6, %p1401_p11 }
  0x56   : > { %p1404_p3 = pnand %p1403_p10, %p1397_p8 }
  0x58   : > { %1407 = shalt.err (!%p1404_p3)
}
  0x59   : > { %s2066_s8 = smov 4   ;;  %s2067_s14 = smov 64  }
  0x5a   : > { %1239 = dma.hbm_to_vmem [thread:$0]  (!%p1782_p9), %s1778_s11, 256, %s1780_s15, %s1793_s16, %s2067_s14, %s2067_s14, %s2066_s8  }
  0x5b   : > { %s1614_s18 = smov [#allocation8]   ;;  %s1615_s13 = smov [#allocation9]  }
  0x5c   : > { %s247_s23 = sshll.u32 %s1614_s18, 4  ;;  %s263_s22 = sshll.u32 %s1615_s13, 4  ;;  %s248_s23 = int_to_ptr.vmem [resolvable:$true] %s247_s23  ;;  %s264_s22 = int_to_ptr.vmem [resolvable:$true] %s263_s22 }
  0x5d   : > { %s1408_s29 = scalar_lea.hbm %s2024_s3, 2048 }
  0x5e   : > { %p1409_p4 = scmp.ne.s32.totalorder %s2024_s3, %s1408_s29  ;;  %p1415_p7 = scmp.lt.u32.totalorder %s1408_s29, %s2024_s3 }
  0x60   : > { %p1411_p8 = pnand %p1409_p4, %p1735_p13 }
  0x62   : > { %p1412_p11 = pneg %p1411_p8 }
  0x64   : > { %p1417_p2 = pnand %p1415_p7, %p1412_p11 }
  0x66   : > { %1420 = shalt.err (!%p1417_p2)
}
  0x67   : > { %s1421_s15 = scalar_lea.vmem %s248_s23, 2048  ;;  %p1429_p6 = scmp.lt.s32.totalorder %s248_s23, %s248_s23 }
  0x68   : > { %p1422_p5 = scmp.ne.s32.totalorder %s248_s23, %s1421_s15  ;;  %p1430_p10 = scmp.lt.s32.totalorder %s1421_s15, %s1421_s15 }
  0x6a   : > { %p1424_p12 = pnand %p1422_p5, %p1735_p13  ;;  %p1431_p3 = por %p1430_p10, %p1429_p6 }
  0x6c   : > { %p1425_p1 = pneg %p1424_p12 }
  0x6e   : > { %p1432_p0 = pnand %p1431_p3, %p1425_p1 }
  0x70   : > { %1435 = shalt.err (!%p1432_p0)
}
  0x71   : > { %p2068_p4 = scmp.ne.s32.totalorder %s2057_s12, 0  ;;  %s1436_s13 = scalar_lea.hbm %s2026_s5, 2048 }
  0x72   : > { %p1437_p8 = scmp.ne.s32.totalorder %s2026_s5, %s1436_s13  ;;  %p1443_p7 = scmp.lt.u32.totalorder %s1436_s13, %s2026_s5 }
  0x73   : > { %1232 = dma.hbm_to_vmem [thread:$0]  (!%p2068_p4), %s2024_s3, 2048, %s248_s23, [#allocation6], %s2067_s14, %s2067_s14, %s2066_s8  }
  0x74   : > { %p1439_p0 = pnand %p1437_p8, %p1735_p13 }
  0x76   : > { %p1440_p11 = pneg %p1439_p0 }
  0x78   : > { %p1445_p2 = pnand %p1443_p7, %p1440_p11 }
  0x7a   : > { %1448 = shalt.err (!%p1445_p2)
}
  0x7b   : > { %s1449_s15 = scalar_lea.vmem %s264_s22, 2048  ;;  %p1457_p6 = scmp.lt.s32.totalorder %s264_s22, %s264_s22 }
  0x7c   : > { %p1450_p5 = scmp.ne.s32.totalorder %s264_s22, %s1449_s15  ;;  %p1458_p10 = scmp.lt.s32.totalorder %s1449_s15, %s1449_s15 }
  0x7e   : > { %p1452_p12 = pnand %p1450_p5, %p1735_p13  ;;  %p1459_p3 = por %p1458_p10, %p1457_p6 }
  0x80   : > { %p1453_p1 = pneg %p1452_p12 }
  0x82   : > { %p1460_p9 = pnand %p1459_p3, %p1453_p1 }
  0x84   : > { %1463 = shalt.err (!%p1460_p9)
}
  0x85   : > { %s1616_s23 = smov 128   ;;  %s1617_s0 = smov 8  }
  0x86   : > { %1235 = dma.hbm_to_vmem [thread:$0]  (!%p2068_p4), %s2026_s5, 2048, %s264_s22, [#allocation10], %s1616_s23, %s1616_s23, %s1617_s0  }
  0x87   : > { %s1464_s21 = scalar_lea.hbm %s1789_s24, 256  ;;  %p2069_p8 = scmp.ne.s32.totalorder %s2065_s17, 0 }
  0x88   : > { %p1465_p13 = scmp.ne.s32.totalorder %s1789_s24, %s1464_s21  ;;  %s1469_s1 = scalar_lea.hbm %s2023_s2, 512 }
  0x89   : > { %p2070_p0 = pneg %p2069_p8  ;;  %p1470_p9 = scmp.lt.u32.totalorder %s1789_s24, %s2023_s2 }
  0x8a   : > { %p1471_p2 = scmp.lt.u32.totalorder %s1469_s1, %s1464_s21  ;;  %p1473_p12 = scmp.lt.u32.totalorder %s1464_s21, %s1789_s24 }
  0x8b   : > { %p1467_p11 = pnand %p1465_p13, %p2070_p0 }
  0x8c   : > { %p1472_p5 = por %p1471_p2, %p1470_p9 }
  0x8d   : > { %p1468_p7 = pneg %p1467_p11 }
  0x8e   : > { %p1474_p1 = por %p1473_p12, %p1472_p5 }
  0x90   : > { %p1475_p6 = pnand %p1474_p1, %p1468_p7 }
  0x92   : > { %1478 = shalt.err (!%p1475_p6)
}
  0x93   : > { %s1479_s12 = scalar_lea.vmem %s1825_s10, 256  ;;  %p2071_p10 = pmov %p2070_p0 }
  0x94   : > { %p1480_p4 = scmp.ne.s32.totalorder %s1825_s10, %s1479_s12  ;;  %s1618_s22 = smov [#allocation7]  }
  0x95   : > { %s1484_s11 = sshll.u32 %s1618_s22, 4  ;;  %s1485_s11 = int_to_ptr.vmem [resolvable:$false] %s1484_s11 }
  0x96   : > { %p1482_p3 = pnand %p1480_p4, %p2071_p10  ;;  %s1486_s15 = scalar_lea.vmem %s1485_s11, 512 }
  0x97   : > { %p1487_p0 = scmp.lt.s32.totalorder %s1825_s10, %s1485_s11  ;;  %p1488_p11 = scmp.lt.s32.totalorder %s1486_s15, %s1479_s12 }
  0x98   : > { %p1483_p13 = pneg %p1482_p3 }
  0x99   : > { %p1489_p9 = por %p1488_p11, %p1487_p0 }
  0x9b   : > { %p1490_p2 = pnand %p1489_p9, %p1483_p13 }
  0x9d   : > { %1493 = shalt.err (!%p1490_p2)
}
  0x9e   : > { %1242 = dma.hbm_to_vmem [thread:$0]  (!%p2069_p8), %s1789_s24, 256, %s1825_s10, %s1793_s16, %s2067_s14, %s2067_s14, %s2066_s8  }
  0x9f   : > { %p2072_p7 = scmp.ne.s32.totalorder %s2056_s9, 0 }
  0xa0   : > { %s323_s23 = sand.u32 (!%p2072_p7), 1, %s1687_s28   ;;  %s1897_s0 = sand.u32 (!%p2072_p7), 1, %s1600_s25  }
  0xa1   : > { %321 = sbr.rel (%p2072_p7) target bundleno = 901 (0x385), region = 44  ;;  %s1900_s26 = sshll.u32 (!%p2072_p7), %s1897_s0, 4 }
  0xa2   : > { %s324_s17 = scalar_lea.sflag (!%p2072_p7), [#allocation3], %s323_s23  ;;  %s327_s27 = scalar_lea.vmem (!%p2072_p7), [#allocation2], %s1900_s26 }
  0xa3   : > { %p2073_p5 = scmp.ne.s32.totalorder (!%p2072_p7), %s2053_s30, 0 }
  0xa8   : > { %1567 = dma.done.wait (%p2073_p5), %s324_s17, 256  }
  0xa9   : > { %1569 = vsyncadd (%p2073_p5), %s324_s17, 4294967040  ;;  %p2074_p8 = scmp.eq.s32.totalorder %s1687_s28, 0 }
  0xab   : > { %1571 = dma.done.wait (%p2074_p8), [#allocation6], 512   ;;  %p2075_p12 = pmov %p2074_p8 }
  0xac   : > { %s340_s9 = scalar_lea.vmem [#allocation7], %s1900_s26 }
  0xad   : > { %1573 = vsyncadd (%p2075_p12), [#allocation6], 4294966784 }
  0xae   : > { %1575 = dma.done.wait (%p2073_p5), %s324_s17, 256  }
  0xaf   : > { %1577 = vsyncadd (%p2073_p5), %s324_s17, 4294967040  ;;  %p2076_p1 = pmov %p2074_p8 }
  0xb1   : > { %1579 = dma.done.wait (%p2076_p1), [#allocation6], 2048   ;;  %p2077_p6 = pmov %p2076_p1 }
  0xb2   : > { %p2078_p4 = pmov %p2076_p1 }
  0xb3   : > { %1581 = vsyncadd (%p2077_p6), [#allocation6], 4294965248 }
  0xb4   : > { %1583 = dma.done.wait (%p2078_p4), [#allocation10], 2048   ;;  %p2079_p10 = pmov %p2076_p1 }
  0xb5   : > { %v1302_v0 = vld [vmem:[#allocation5] sm:$0xff]   ;;  %v1303_v1 = vld [vmem:[#allocation5 + $0x8] sm:$0xff]   ;;  %v1304_v2 = vld [vmem:[#allocation5 + $0x10] sm:$0xff]   ;;  %vm440_vm0 = vcmask 523264   ;;  %v1619_v46 = vmov 0   ;;  %s1085_s16 = sshll.u32 %s1897_s0, 5 }
  0xb6   : > { %1585 = vsyncadd (%p2079_p10), [#allocation10], 4294965248  ;;  %1194 = vmatprep.subr.bf16.mxu0 %v1302_v0  ;;  %v1306_v3 = vld [vmem:[%s327_s27] sm:$0xff]   ;;  %v1305_v4 = vld [vmem:[#allocation5 + $0x18] sm:$0xff]   ;;  %s388_s24 = scalar_lea.vmem [#allocation12], %s1085_s16  ;;  %s381_s14 = scalar_lea.vmem [#allocation11], %s1900_s26 }
  0xb7   : > { %1195 = vmatpush3.bf16.msra.mxu0 %v1302_v0  ;;  %1202 = vmatprep.mubr.msk.bf16.mxu0 %vm440_vm0, %v1306_v3  ;;  %v1308_v5 = vld [vmem:[#allocation8 + $0x40] sm:$0xff]   ;;  %v1310_v7 = vld [vmem:[#allocation8 + $0x48] sm:$0xff]   ;;  %v1312_v9 = vld [vmem:[#allocation8 + $0x50] sm:$0xff]   ;;  %s912_s8 = sshll.u32 %s388_s24, 4  ;;  %s896_s21 = sshll.u32 %s381_s14, 4  ;;  %s1941_s8 = int_to_ptr.vmem [resolvable:$true] %s912_s8  ;;  %s1943_s21 = int_to_ptr.vmem [resolvable:$true] %s896_s21 }
  0xb8   : > { %1196 = vmatprep.subr.bf16.mxu0 %v1303_v1  ;;  %v1309_v6 = vld [vmem:[#allocation8] sm:$0xff]   ;;  %1166 = vmatprep.subr.bf16.mxu1 %v1308_v5  ;;  %v1311_v8 = vld [vmem:[#allocation8 + $0x8] sm:$0xff]   ;;  %v1313_v11 = vld [vmem:[#allocation8 + $0x10] sm:$0xff]   ;;  %s1147_s18 = sshll.u32 %s1687_s28, 8  ;;  %s1148_s13 = sshll.u32 %s1687_s28, 9 }
  0xb9   : > { %1167 = vmatpush3.bf16.msra.mxu1 %v1309_v6  ;;  %v1307_v10 = vld [vmem:[%s327_s27 + $0x8] sm:$0xff]   ;;  %v1316_v14 = vld [vmem:[#allocation8 + $0x60] sm:$0xff]   ;;  %v1320_v18 = vld [vmem:[#allocation8 + $0x70] sm:$0xff]   ;;  %s1948_s29 = scalar_lea.hbm %s2027_s6, %s1147_s18  ;;  %s1953_s11 = scalar_lea.hbm %s2028_s7, %s1148_s13 }
  0xba   : > { %1168 = vmatprep.subr.bf16.mxu1 %v1310_v7  ;;  %v1314_v12 = vld [vmem:[#allocation8 + $0x58] sm:$0xff]   ;;  %v1317_v15 = vld [vmem:[#allocation8 + $0x20] sm:$0xff]   ;;  %v1318_v16 = vld [vmem:[#allocation8 + $0x68] sm:$0xff]   ;;  %s883_s28 = scalar_lea.sflag [#allocation13], %s1897_s0  ;;  %s1494_s15 = scalar_lea.vmem %s1941_s8, 512 }
  0xbb   : > { %1197 = vmatpush3.bf16.msra.mxu0 %v1303_v1  ;;  %v1315_v13 = vld [vmem:[#allocation8 + $0x18] sm:$0xff]   ;;  %v1319_v17 = vld [vmem:[#allocation8 + $0x28] sm:$0xff]   ;;  %v1321_v19 = vld [vmem:[#allocation8 + $0x30] sm:$0xff]   ;;  %p1495_p3 = scmp.ne.s32.totalorder %s1941_s8, %s1494_s15  ;;  %p2080_p13 = scmp.ne.s32.totalorder %s2063_s20, 0 }
  0xbc   : > { %1198 = vmatprep.subr.bf16.mxu0 %v1304_v2  ;;  %v1322_v20 = vld [vmem:[#allocation8 + $0x78] sm:$0xff]   ;;  %v1324_v22 = vld [vmem:[%s340_s9] sm:$0xff]   ;;  %s1620_s23 = smov [#allocation12]  }
  0xbd   : > { %1169 = vmatpush3.bf16.msra.mxu1 %v1311_v8  ;;  %v1323_v21 = vld [vmem:[#allocation8 + $0x38] sm:$0xff]   ;;  %681 = vmatprep.mubr.bf16.mxu1 %v1324_v22  ;;  %v1326_v23 = vld [vmem:[#allocation9] ss:$8 sps:$4 sm:$0xff]   ;;  %v1328_v24 = vld [vmem:[#allocation9 + $0x4] ss:$8 sps:$4 sm:$0xff]   ;;  %p1496_p0 = pnand %p1495_p3, %p2080_p13  ;;  %s1498_s26 = sshll.u32 %s1620_s23, 4  ;;  %s1499_s26 = int_to_ptr.vmem [resolvable:$false] %s1498_s26 }
  0xbe   : > { %1170 = vmatprep.subr.bf16.mxu1 %v1312_v9  ;;  %v1331_v25 = vld [vmem:[#allocation9 + $0x14] ss:$8 sps:$4 sm:$0xff]   ;;  %v1329_v26 = vld [vmem:[#allocation9 + $0x10] ss:$8 sps:$4 sm:$0xff]   ;;  %v1334_v27 = vld [vmem:[#allocation9 + $0x24] ss:$8 sps:$4 sm:$0xff]   ;;  %p1501_p9 = scmp.lt.s32.totalorder %s1941_s8, %s1499_s26 }
  0xbf   : > { %1199 = vmatpush3.bf16.msra.mxu0 %v1304_v2  ;;  %v1332_v28 = vld [vmem:[#allocation9 + $0x20] ss:$8 sps:$4 sm:$0xff]   ;;  %v1337_v29 = vld [vmem:[#allocation9 + $0x34] ss:$8 sps:$4 sm:$0xff]   ;;  %v1335_v30 = vld [vmem:[#allocation9 + $0x30] ss:$8 sps:$4 sm:$0xff]   ;;  %p1497_p11 = pneg %p1496_p0 }
  0xc0   : > { %1200 = vmatprep.subr.bf16.mxu0 %v1305_v4  ;;  %v1340_v31 = vld [vmem:[#allocation9 + $0x44] ss:$8 sps:$4 sm:$0xff]   ;;  %v1338_v32 = vld [vmem:[#allocation9 + $0x40] ss:$8 sps:$4 sm:$0xff]   ;;  %v1343_v40 = vld [vmem:[#allocation9 + $0x54] ss:$8 sps:$4 sm:$0xff]  }
  0xc1   : > { %1171 = vmatpush3.bf16.msra.mxu1 %v1313_v11  ;;  %v1325_v38 = vld [vmem:[%s340_s9 + $0x8] sm:$0xff]   ;;  %v1096_v48 = vld [vmem:[%s2025_s4] ss:$0 sm:$0xff]  ;;  %s1500_s17 = scalar_lea.vmem %s1499_s26, 1024 }
  0xc2   : > { %1172 = vmatprep.subr.bf16.mxu1 %v1314_v12  ;;  %v1341_v41 = vld [vmem:[#allocation9 + $0x50] ss:$8 sps:$4 sm:$0xff]   ;;  %v1346_v42 = vld [vmem:[#allocation9 + $0x64] ss:$8 sps:$4 sm:$0xff]   ;;  %v1344_v43 = vld [vmem:[#allocation9 + $0x60] ss:$8 sps:$4 sm:$0xff]   ;;  %p1502_p2 = scmp.lt.s32.totalorder %s1500_s17, %s1494_s15 }
  0xc3   : > { %1201 = vmatpush3.bf16.msra.mxu0 %v1305_v4  ;;  %v1349_v44 = vld [vmem:[#allocation9 + $0x74] ss:$8 sps:$4 sm:$0xff]   ;;  %v1347_v45 = vld [vmem:[#allocation9 + $0x70] ss:$8 sps:$4 sm:$0xff]  }
  0xc4   : > { %800 = vmatprep.subr.bf16.mxu0 %v1328_v24  ;;  %p1503_p7 = por %p1502_p2, %p1501_p9 }
  0xc5   : > { %1173 = vmatpush3.bf16.msra.mxu1 %v1315_v13 }
  0xc6   : > { %1203 = vmatmul.mubr.msk.bf16.vlgmr.msra.gmra.mrb[0].mxu0 %vm440_vm0, %v1307_v10  ;;  %1174 = vmatprep.subr.bf16.mxu1 %v1316_v14  ;;  %p1504_p5 = pnand %p1503_p7, %p1497_p11 }
  0xc7   : > { %801 = vmatpush1.bf16.msra.mxu0 %v1326_v23  ;;  %832 = vmatprep.mubr.bf16.mxu0 %v1619_v46 }
  0xc8   : > { %802 = vmatprep.subr.bf16.mxu0 %v1331_v25 }
  0xc9   : > { %1175 = vmatpush3.bf16.msra.mxu1 %v1317_v15 }
  0xca   : > { %1176 = vmatprep.subr.bf16.mxu1 %v1318_v16 }
  0xcb   : > { %803 = vmatpush1.bf16.msra.mxu0 %v1329_v26 }
  0xcc   : > { %804 = vmatprep.subr.bf16.mxu0 %v1334_v27 }
  0xcd   : > { %1177 = vmatpush3.bf16.msra.mxu1 %v1319_v17 }
  0xce   : > { %1178 = vmatprep.subr.bf16.mxu1 %v1320_v18 }
  0xcf   : > { %805 = vmatpush1.bf16.msra.mxu0 %v1332_v28 }
  0xd0   : > { %806 = vmatprep.subr.bf16.mxu0 %v1337_v29 }
  0xd1   : > { %1179 = vmatpush3.bf16.msra.mxu1 %v1321_v19 }
  0xd2   : > { %1180 = vmatprep.subr.bf16.mxu1 %v1322_v20 }
  0xd3   : > { %807 = vmatpush1.bf16.msra.mxu0 %v1335_v30 }
  0xd4   : > { %808 = vmatprep.subr.bf16.mxu0 %v1340_v31 }
  0xd5   : > { %1181 = vmatpush3.bf16.msra.mxu1 %v1323_v21 }
  0xd7   : > { %809 = vmatpush1.bf16.msra.mxu0 %v1338_v32 }
  0xd8   : > { %810 = vmatprep.subr.bf16.mxu0 %v1343_v40 }
  0xdb   : > { %811 = vmatpush1.bf16.msra.mxu0 %v1341_v41 }
  0xdc   : > { %812 = vmatprep.subr.bf16.mxu0 %v1346_v42 }
  0xdf   : > { %813 = vmatpush1.bf16.msra.mxu0 %v1344_v43 }
  0xe0   : > { %814 = vmatprep.subr.bf16.mxu0 %v1349_v44 }
  0xe3   : > { %815 = vmatpush1.bf16.msra.mxu0 %v1347_v45 }
 0x199   : > { %v1204_v33 = vpop.f32.mrb[0].mxu0 }
 0x19a   : > { %v481_v34 = vpop.f32.mrb[1].mxu0 }
 0x19b   : > { %v1205_v35 = vpop.f32.mrb[2].mxu0 }
 0x19c   : > { %v497_v36 = vpack.c.bf16 %v1205_v35, %v1204_v33  ;;  %v484_v37 = vpop.f32.mrb[3].mxu0 }
 0x19d   : > { %v496_v39 = vpack.c.bf16 %v484_v37, %v481_v34 }
 0x19f   : > { %682 = vmatmul.mubr.bf16.vlgmr.msra.gmra.mrb[0].mxu1 %v496_v39 }
 0x1a0   : > { %689 = vmatprep.mubr.bf16.mxu1 %v1325_v38 }
 0x1a7   : > { %690 = vmatmul.mubr.bf16.gmra.mrb[4].mxu1 %v497_v36 }
 0x272   : > { %v1182_v47 = vpop.f32.mrb[0].mxu1 }
 0x273   : > { %v1183_v49 = vpop.f32.mrb[1].mxu1 }
 0x274   : > { %v1184_v50 = vadd.f32 %v1183_v49, %v1182_v47  ;;  %v1185_v51 = vpop.f32.mrb[2].mxu1 }
 0x275   : > { %v1186_v52 = vpop.f32.mrb[3].mxu1 }
 0x276   : > { %v684_v53 = vadd.f32 %v1184_v50, %v1096_v48  ;;  %v1187_v54 = vadd.f32 %v1186_v52, %v1185_v51 }
 0x278   : > { %v687_v55 = vadd.f32 %v1187_v54, %v1096_v48  ;;  %v698_v56 = vmax.f32 %v684_v53, 0.0 }
 0x27a   : > { %v699_v57 = vmax.f32 %v687_v55, 0.0  ;;  %v1188_v58 = vpop.f32.mrb[4].mxu1 }
 0x27b   : > { %v1189_v59 = vpop.f32.mrb[5].mxu1 }
 0x27c   : > { %v702_v60 = vpack.c.bf16 %v699_v57, %v698_v56  ;;  %v1190_v61 = vadd.f32 %v1189_v59, %v1188_v58  ;;  %v1191_v62 = vpop.f32.mrb[6].mxu1 }
 0x27d   : > { %v1192_v63 = vpop.f32.mrb[7].mxu1 }
 0x27e   : > { %v692_v0 = vadd.f32 %v1190_v61, %v1096_v48  ;;  %v1193_v1 = vadd.f32 %v1192_v63, %v1191_v62  ;;  %833 = vmatmul.mubr.bf16.vlgmr.msra.gmra.mrb[4].mxu0 %v702_v60 }
 0x27f   : > { %842 = vmatprep.mubr.bf16.mxu0 %v1619_v46 }
 0x280   : > { %v695_v2 = vadd.f32 %v1193_v1, %v1096_v48  ;;  %v700_v3 = vmax.f32 %v692_v0, 0.0 }
 0x282   : > { %v701_v4 = vmax.f32 %v695_v2, 0.0 }
 0x284   : > { %v703_v5 = vpack.c.bf16 %v701_v4, %v700_v3 }
 0x286   : > { %843 = vmatmul.mubr.bf16.gmra.mrb[8].mxu0 %v703_v5 }
 0x351   : > { %v834_v6 = vpop.f32.mrb[4].mxu0 }
 0x352   : > { %v836_v7 = vpop.f32.mrb[5].mxu0 }
 0x353   : > { %873 = vst [vmem:[%s388_s24] sm:$0xff] %v836_v7  ;;  %v838_v8 = vpop.f32.mrb[6].mxu0 }
 0x354   : > { %v1152_v9 = vpack.c.bf16 %v838_v8, %v834_v6  ;;  %v840_v10 = vpop.f32.mrb[7].mxu0 }
 0x355   : > { %874 = vst [vmem:[%s388_s24 + $0x8] sm:$0xff] %v840_v10 }
 0x356   : > { %1153 = vst [vmem:[%s381_s14] sm:$0xff] %v1152_v9  }
 0x359   : > { %v844_v11 = vpop.f32.mrb[8].mxu0 }
 0x35a   : > { %v846_v12 = vpop.f32.mrb[9].mxu0 }
 0x35b   : > { %875 = vst [vmem:[%s388_s24 + $0x10] sm:$0xff] %v846_v12  ;;  %v848_v13 = vpop.f32.mrb[10].mxu0 }
 0x35c   : > { %v1157_v14 = vpack.c.bf16 %v848_v13, %v844_v11  ;;  %v850_v15 = vpop.f32.mrb[11].mxu0 }
 0x35d   : > { %876 = vst [vmem:[%s388_s24 + $0x18] sm:$0xff] %v850_v15 }
 0x35e   : > { %1159 = vst [vmem:[%s381_s14 + $0x8] sm:$0xff] %v1157_v14  }
 0x35f   : > { %1507 = shalt.err (!%p1504_p5)
}
 0x360   : > { %s1508_s27 = scalar_lea.hbm %s1953_s11, 512  ;;  %s1512_s10 = scalar_lea.hbm %s2028_s7, 1024 }
 0x361   : > { %p1509_p8 = scmp.ne.s32.totalorder %s1953_s11, %s1508_s27  ;;  %p1513_p6 = scmp.lt.u32.totalorder %s1953_s11, %s2028_s7 }
 0x362   : > { %p1514_p4 = scmp.lt.u32.totalorder %s1512_s10, %s1508_s27  ;;  %p1516_p3 = scmp.lt.u32.totalorder %s1508_s27, %s1953_s11 }
 0x363   : > { %p1510_p12 = pnand %p1509_p8, %p2080_p13 }
 0x364   : > { %p1515_p10 = por %p1514_p4, %p1513_p6 }
 0x365   : > { %p1511_p1 = pneg %p1510_p12 }
 0x366   : > { %p1517_p0 = por %p1516_p3, %p1515_p10 }
 0x368   : > { %p1518_p11 = pnand %p1517_p0, %p1511_p1 }
 0x36a   : > { %1521 = shalt.err (!%p1518_p11)
}
 0x36b   : > { %s1621_s14 = smov 128   ;;  %s1622_s18 = smov 8  }
 0x36c   : > { %1223 = dma.vmem_to_hbm [thread:$0]  (%p2080_p13), %s1941_s8, 512, %s1953_s11, %s883_s28, %s1621_s14, %s1621_s14, %s1622_s18  }
 0x36d   : > { %s878_s13 = scalar_lea.sflag [#allocation4], %s1897_s0  ;;  %s1522_s1 = scalar_lea.vmem %s1943_s21, 256 }
 0x36e   : > { %p1523_p9 = scmp.ne.s32.totalorder %s1943_s21, %s1522_s1  ;;  %s1623_s19 = smov [#allocation11]  }
 0x36f   : > { %s1526_s12 = sshll.u32 %s1623_s19, 4  ;;  %s1527_s12 = int_to_ptr.vmem [resolvable:$false] %s1526_s12 }
 0x370   : > { %p1524_p2 = pnand %p1523_p9, %p2080_p13  ;;  %s1528_s22 = scalar_lea.vmem %s1527_s12, 512 }
 0x371   : > { %p1529_p5 = scmp.lt.s32.totalorder %s1943_s21, %s1527_s12  ;;  %p1530_p8 = scmp.lt.s32.totalorder %s1528_s22, %s1522_s1 }
 0x372   : > { %p1525_p7 = pneg %p1524_p2 }
 0x373   : > { %p1531_p12 = por %p1530_p8, %p1529_p5 }
 0x375   : > { %p1532_p1 = pnand %p1531_p12, %p1525_p7 }
 0x377   : > { %1535 = shalt.err (!%p1532_p1)
}
 0x378   : > { %s1536_s8 = scalar_lea.hbm %s1948_s29, 256  ;;  %s1540_s15 = scalar_lea.hbm %s2027_s6, 512 }
 0x379   : > { %p1537_p6 = scmp.ne.s32.totalorder %s1948_s29, %s1536_s8  ;;  %p1541_p3 = scmp.lt.u32.totalorder %s1948_s29, %s2027_s6 }
 0x37a   : > { %p1542_p0 = scmp.lt.u32.totalorder %s1540_s15, %s1536_s8  ;;  %p1544_p9 = scmp.lt.u32.totalorder %s1536_s8, %s1948_s29 }
 0x37b   : > { %p1538_p4 = pnand %p1537_p6, %p2080_p13 }
 0x37c   : > { %p1543_p11 = por %p1542_p0, %p1541_p3 }
 0x37d   : > { %p1539_p10 = pneg %p1538_p4 }
 0x37e   : > { %p1545_p2 = por %p1544_p9, %p1543_p11 }
 0x380   : > { %p1546_p7 = pnand %p1545_p2, %p1539_p10 }
 0x382   : > { %1549 = shalt.err (!%p1546_p7)
}
 0x383   : > { %s1624_s17 = smov 64   ;;  %s1625_s27 = smov 4  }
 0x384   : > { %1222 = dma.vmem_to_hbm [thread:$0]  (%p2080_p13), %s1943_s21, 256, %s1948_s29, %s878_s13, %s1624_s17, %s1624_s17, %s1625_s27  }
 0x385 PF: > { %s2081_s9 = sld [smem:[#allocation21_spill]]  ;;  %s2082_s30 = sld [smem:[#allocation24_spill]] }
 0x386   : > { %s2083_s10 = sld [smem:[#allocation23_spill]] }
 0x38b   : > { %s927_s16 = sand.u32 1, %s2081_s9   ;;  %p2084_p5 = scmp.ne.s32.totalorder %s2082_s30, 0 }
 0x38c   : > { %p2085_p8 = scmp.ge.s32.totalorder %s2083_s10, 2  ;;  %s928_s24 = scalar_lea.sflag [#allocation4], %s927_s16 }
 0x38e   : > { %p1244_p12 = pnand %p2085_p8, %p2084_p5 }
 0x390   : > { %1587 = dma.done.wait (!%p1244_p12), %s928_s24, 256  }
 0x391   : > { %1589 = vsyncadd (!%p1244_p12), %s928_s24, 4294967040  ;;  %s937_s14 = scalar_lea.sflag [#allocation13], %s927_s16 }
 0x392   : > { %1591 = dma.done.wait (!%p1244_p12), %s937_s14, 512  }
 0x393   : > { %1593 = vsyncadd (!%p1244_p12), %s937_s14, 4294966784  ;;  %s2086_s27 = sld [smem:[#allocation25_spill]]  ;;  %s2087_s18 = sld [smem:[#allocation22_spill]] }
 0x394   : > { %s2088_s26 = sld [smem:[#allocation26_spill]]  ;;  %s2089_s24 = smov %s1600_s25 }
 0x399   : > { %p26_p13 = scmp.ge.s32.totalorder %s2086_s27, 4   ;;  %s2090_s25 = smov %s2087_s18 }
 0x39b   :  { %28 = sbr.rel (!%p26_p13) target bundleno = 12 (0xc), region = 129 }
 0x3a2   :  { %942 = vsyncpa [#allocation3], 1 }
 0x3a3   :  { %944 = vsyncpa [#allocation3 + $0x1], 1 }
 0x3a4   :  { %945 = vsyncpa [#allocation6], 1 }
 0x3a5   :  { %946 = vsyncpa [#allocation10], 1 }
 0x3a6   :  { %947 = vsyncpa [#allocation4], 1 }
 0x3a7   :  { %949 = vsyncpa [#allocation4 + $0x1], 1 }
 0x3a8   :  { %950 = vsyncpa [#allocation13], 1 }
 0x3a9   :  { %952 = vsyncpa [#allocation13 + $0x1], 1 }

</bundles_post_ra>
